<compile_context>
chip_gen: v6e
topology: v6e:2x2x1
jax: 0.10.0
libtpu: 0.0.40
codegen_flags: <defaults>
</compile_context>

<pallas_src>
import functools

import numpy as np
import jax
import jax.numpy as jnp
from jax import lax
from jax.experimental import pallas as pl
from jax.experimental.pallas import tpu as pltpu


def _resblock_kernel(x_ref, mask_ref, dww_ref, dws_ref, dwb_ref,
                     pww_ref, pws_ref, pwb_ref, out_ref,
                     *, K, P, dil, W, TLANE, H_A, mxu_dtype):
    C = out_ref.shape[1]
    WIN = TLANE + 2 * H_A
    s = pl.program_id(1)
    base = pl.multiple_of(s * TLANE, TLANE)       # strip start in padded lane coords

    # Halo'd strip of the resident plane: lanes [base, base + WIN) of the
    # zero-padded (C, H_A + HWp + H_A) plane.  base is 128-aligned -> aligned load.
    win = x_ref[0, :, pl.ds(base, WIN)].astype(jnp.float32)      # (C, WIN)
    masks = mask_ref[0]                                          # (K, TLANE) f32

    # ---- depthwise KxK conv, grouped by column offset ----
    # Row out-of-bounds taps read the zero halo/tail of the padded plane, so only
    # column wrap needs masking (one multiply per non-center column per strip).
    acc = jnp.zeros((C, TLANE), jnp.float32)
    for dw in range(K):
        rw = dw * dil - P
        col = None
        for dh in range(K):
            rh = dh * dil - P
            t = dh * K + dw
            lo = H_A + rh * W + rw                  # static in-window lane offset
            tap = win[:, lo:lo + TLANE]             # (C, TLANE) static slice
            term = tap * dww_ref[t]                 # (C,TLANE)*(C,1) per-channel wt
            col = term if col is None else col + term
        if rw == 0:
            acc = acc + col                         # center column: no mask needed
        else:
            acc = acc + col * masks[dw:dw + 1, :]   # (C,TLANE)*(1,TLANE)

    # folded BN1 (+ dw-conv bias) + ReLU
    dw_out = jnp.maximum(acc * dws_ref[...] + dwb_ref[...], 0.0)    # (C, TLANE)

    # ---- pointwise 1x1 conv on the MXU: (Cout, C) x (C, TLANE) ----
    pw = jnp.dot(pww_ref[...].astype(mxu_dtype), dw_out.astype(mxu_dtype),
                 preferred_element_type=jnp.float32)
    # folded BN2 (+ pw-conv bias) + ReLU
    pw = jnp.maximum(pw * pws_ref[...] + pwb_ref[...], 0.0)

    # ---- residual add: 128-aligned interior of the same window ----
    res = win[:, H_A:H_A + TLANE]
    out_ref[0] = (res + pw).astype(out_ref.dtype)


def resblock_pallas(x_nchw, dw_weight, dw_scale, dw_bias,
                    pw_weight, pw_scale, pw_bias, *,
                    kernel_size, stride=1, dilation=1,
                    lane_tile=None, mxu_dtype=None):
    """ResBlock forward.

    x_nchw:    (N, C, H, W) float32 (PyTorch layout).
    dw_weight: (C, 1, K, K) depthwise Conv2d weight (PyTorch layout).
    dw_scale/dw_bias: (C,) folded BN1 (+ dw conv bias), see fold_bn().
    pw_weight: (Cout, C, 1, 1) pointwise Conv2d weight.
    pw_scale/pw_bias: (Cout,) folded BN2 (+ pw conv bias).
    mxu_dtype: None -> bf16 MXU operands when min(C, Cout) >= 64, else f32.
    """
    N, C, H, W = x_nchw.shape
    K = int(kernel_size)
    Cout = pw_weight.shape[0]
    assert C == Cout, "ResBlock residual add requires in_channel == out_channel"
    assert stride == 1, "stride != 1 breaks the residual add (as in the PyTorch module)"
    assert K % 2 == 1, "'same'-style padding of the PyTorch module needs an odd kernel size"
    P = (K + (dilation - 1) * (K - 1) - stride) // 2
    HW = H * W

    # ---- choose TLANE first (C-aware: bound vreg pressure of win/acc/col), then
    # pad HWp up to a multiple of TLANE.
    if lane_tile is None:
        if C <= 16:
            t = 512
        elif C <= 32:
            t = 256
        else:
            t = 128   # TODO(synk): add a channel grid axis for C >= 64 to allow larger TLANE.
        lane_tile = min(t, ((HW + 127) // 128) * 128)
    TLANE = int(lane_tile)
    assert TLANE % 128 == 0
    HWp = ((HW + TLANE - 1) // TLANE) * TLANE
    NS = HWp // TLANE

    halo = P * W + P                                  # max |lane offset| of a tap
    H_A = max(128, ((halo + 127) // 128) * 128)       # halo rounded to 128 lanes
    HWtot = HWp + 2 * H_A

    if mxu_dtype is None:
        mxu_dtype = jnp.bfloat16 if min(C, Cout) >= 64 else jnp.float32

    # ---- one-time zero-padded lane-dense plane (single XLA pad pass through HBM;
    # replaces the per-strip VMEM halo copy of the previous revision).
    x_flat = x_nchw.reshape(N, C, HW)
    x_pad = jnp.pad(x_flat, ((0, 0), (0, 0), (H_A, H_A + HWp - HW)))

    # ---- pack weights / folded BN params for the (C-sublane, spatial-lane) kernel
    dww = (jnp.transpose(dw_weight[:, 0, :, :], (1, 2, 0))
           .reshape(K * K, C)[..., None].astype(jnp.float32))     # (K*K, C, 1)
    dws = dw_scale.reshape(C, 1).astype(jnp.float32)
    dwb = dw_bias.reshape(C, 1).astype(jnp.float32)
    pww = pw_weight[:, :, 0, 0].astype(jnp.float32)               # (Cout, C)
    pws = pw_scale.reshape(Cout, 1).astype(jnp.float32)
    pwb = pw_bias.reshape(Cout, 1).astype(jnp.float32)

    # ---- per-column-offset boundary masks: K rows per strip (not K*K).  Row
    # out-of-bounds is handled by the zero halo/tail of x_pad; only column wrap
    # must be masked.  (Could be int8 to cut HBM further; already K*K/K smaller.)
    pos = np.arange(HWp)
    pcol = pos % W
    m = np.ones((K, HWp), np.float32)
    for dwi in range(K):
        rw = dwi * dilation - P
        m[dwi] = ((pcol + rw >= 0) & (pcol + rw < W)).astype(np.float32)
    mask_tbl = jnp.asarray(m.reshape(K, NS, TLANE).transpose(1, 0, 2))  # (NS, K, TLANE)

    # ---- VMEM budget from actual block sizes, clamped to physical capacity.
    need = 4 * (2 * C * HWtot          # resident plane (double-buffered)
                + 2 * K * TLANE        # mask strips
                + 2 * C * TLANE        # output strips
                + K * K * C + 2 * C + C * Cout + 2 * Cout) + (8 << 20)
    cap = 64 << 20                     # conservative fallback (v7x per-TC VMEM)
    try:
        cap = int(getattr(pltpu.get_tpu_info(), "vmem_capacity_bytes", cap))
    except Exception:
        pass
    if need > cap - (8 << 20):
        raise ValueError(
            "ResBlock plane too large for the resident-plane kernel on this TPU "
            f"(need ~{need >> 20} MiB, capacity {cap >> 20} MiB); implement the "
            "halo'd strip DMA path (see TODO(synk) in the header) or reduce H*W.")
    vmem_limit = int(min(max(need, 32 << 20), cap - (8 << 20)))

    kernel = functools.partial(
        _resblock_kernel, K=K, P=P, dil=dilation, W=W,
        TLANE=TLANE, H_A=H_A, mxu_dtype=mxu_dtype)

    out_flat = pl.pallas_call(
        kernel,
        out_shape=jax.ShapeDtypeStruct((N, C, HWp), x_nchw.dtype),
        grid_spec=pltpu.PrefetchScalarGridSpec(
            num_scalar_prefetch=0,
            grid=(N, NS),                       # s varies fastest -> plane DMA'd once per n
            in_specs=[
                pl.BlockSpec((1, C, HWtot), lambda n, s: (n, 0, 0)),      # padded plane
                pl.BlockSpec((1, K, TLANE), lambda n, s: (s, 0, 0)),      # column masks
                pl.BlockSpec((K * K, C, 1), lambda n, s: (0, 0, 0)),      # dw weights
                pl.BlockSpec((C, 1), lambda n, s: (0, 0)),                # BN1 scale
                pl.BlockSpec((C, 1), lambda n, s: (0, 0)),                # BN1 bias
                pl.BlockSpec((Cout, C), lambda n, s: (0, 0)),             # pw weights
                pl.BlockSpec((Cout, 1), lambda n, s: (0, 0)),             # BN2 scale
                pl.BlockSpec((Cout, 1), lambda n, s: (0, 0)),             # BN2 bias
            ],
            out_specs=pl.BlockSpec((1, C, TLANE), lambda n, s: (n, 0, s)),
        ),
        compiler_params=pltpu.CompilerParams(
            dimension_semantics=("parallel", "parallel"),
            vmem_limit_bytes=vmem_limit),
    )(x_pad, mask_tbl, dww, dws, dwb, pww, pws, pwb)

    return out_flat[:, :, :HW].reshape(N, C, H, W)


def fold_bn(gamma, beta, mean, var, conv_bias, eps=1e-5):
    """Fold eval-mode BatchNorm (+ preceding conv bias) into scale/bias."""
    scale = gamma / jnp.sqrt(var + eps)
    bias = beta + (conv_bias - mean) * scale
    return scale, bias


def resblock_reference(x, dw_weight, dw_cbias, g1, b1, m1, v1,
                       pw_weight, pw_cbias, g2, b2, m2, v2,
                       *, kernel_size, dilation=1, eps=1e-5):
    """Pure-JAX NCHW reference using the raw conv/BN parameters."""
    N, C, H, W = x.shape
    K = kernel_size
    P = (K + (dilation - 1) * (K - 1) - 1) // 2

    def bn(y, g, b, m, v):
        return (y - m[None, :, None, None]) * (
            g[None, :, None, None] / jnp.sqrt(v[None, :, None, None] + eps)
        ) + b[None, :, None, None]

    y = lax.conv_general_dilated(
        x, dw_weight, window_strides=(1, 1), padding=[(P, P), (P, P)],
        rhs_dilation=(dilation, dilation),
        dimension_numbers=("NCHW", "OIHW", "NCHW"), feature_group_count=C)
    y = y + dw_cbias[None, :, None, None]
    y = jnp.maximum(bn(y, g1, b1, m1, v1), 0.0)

    z = lax.conv_general_dilated(
        y, pw_weight, window_strides=(1, 1), padding="VALID",
        dimension_numbers=("NCHW", "OIHW", "NCHW"))
    z = z + pw_cbias[None, :, None, None]
    z = jnp.maximum(bn(z, g2, b2, m2, v2), 0.0)
    return x + z


if __name__ == "__main__":
    # ResBlock requires in_channel == out_channel for the residual add.
    N, C, H, W = 2, 8, 16, 16
    Cout, K = C, 3

    key = jax.random.PRNGKey(0)
    keys = jax.random.split(key, 12)

    x = jax.random.normal(keys[0], (N, C, H, W), jnp.float32)

    # depthwise Conv2d(C, C, K, groups=C): weight (C,1,K,K) + bias (C,)
    dw_weight = jax.random.normal(keys[1], (C, 1, K, K), jnp.float32) * 0.1
    dw_cbias = jax.random.normal(keys[2], (C,), jnp.float32) * 0.1
    # BatchNorm2d(C), eval mode (running stats)
    g1 = 1.0 + 0.1 * jax.random.normal(keys[3], (C,), jnp.float32)
    b1 = 0.1 * jax.random.normal(keys[4], (C,), jnp.float32)
    m1 = 0.1 * jax.random.normal(keys[5], (C,), jnp.float32)
    v1 = jax.random.uniform(keys[6], (C,), jnp.float32, 0.5, 1.5)

    # pointwise Conv2d(C, Cout, 1): weight (Cout,C,1,1) + bias (Cout,)
    pw_weight = jax.random.normal(keys[7], (Cout, C, 1, 1), jnp.float32) * 0.1
    pw_cbias = jax.random.normal(keys[8], (Cout,), jnp.float32) * 0.1
    g2 = 1.0 + 0.1 * jax.random.normal(keys[9], (Cout,), jnp.float32)
    b2 = 0.1 * jax.random.normal(keys[10], (Cout,), jnp.float32)
    m2 = 0.1 * jax.random.normal(keys[11], (Cout,), jnp.float32)
    v2 = jax.random.uniform(keys[6], (Cout,), jnp.float32, 0.5, 1.5)

    dw_scale, dw_bias = fold_bn(g1, b1, m1, v1, dw_cbias)
    pw_scale, pw_bias = fold_bn(g2, b2, m2, v2, pw_cbias)

    ref = resblock_reference(x, dw_weight, dw_cbias, g1, b1, m1, v1,
                             pw_weight, pw_cbias, g2, b2, m2, v2, kernel_size=K)

    # 1) default tiling (C-aware TLANE; single strip for this plane), fp32 MXU.
    out = jax.block_until_ready(resblock_pallas(
        x, dw_weight, dw_scale, dw_bias, pw_weight, pw_scale, pw_bias,
        kernel_size=K))
    assert out.shape == (N, C, H, W)
    assert jnp.allclose(out, ref, atol=3e-4, rtol=3e-4), "fp32 default-tile mismatch"

    # 2) forced 128-lane strips: exercises the multi-strip (N, NS) grid and the
    #    strip-boundary halo slicing.
    out128 = jax.block_until_ready(resblock_pallas(
        x, dw_weight, dw_scale, dw_bias, pw_weight, pw_scale, pw_bias,
        kernel_size=K, lane_tile=128))
    assert jnp.allclose(out128, ref, atol=3e-4, rtol=3e-4), "fp32 128-lane mismatch"

    # 3) dilation=2 path (different static offsets / masks).
    ref_d2 = resblock_reference(x, dw_weight, dw_cbias, g1, b1, m1, v1,
                                pw_weight, pw_cbias, g2, b2, m2, v2,
                                kernel_size=K, dilation=2)
    out_d2 = jax.block_until_ready(resblock_pallas(
        x, dw_weight, dw_scale, dw_bias, pw_weight, pw_scale, pw_bias,
        kernel_size=K, dilation=2))
    assert jnp.allclose(out_d2, ref_d2, atol=3e-4, rtol=3e-4), "dilated kernel mismatch"

    # 4) bf16 MXU operands for the 1x1 conv (v6e/v7x default for wide C) — looser tol.
    out_bf16 = jax.block_until_ready(resblock_pallas(
        x, dw_weight, dw_scale, dw_bias, pw_weight, pw_scale, pw_bias,
        kernel_size=K, lane_tile=128, mxu_dtype=jnp.bfloat16))
    assert jnp.allclose(out_bf16, ref, atol=5e-2, rtol=5e-2), "bf16-MXU kernel mismatch"

    print("KERNEL_OK")
</pallas_src>

<mosaic_0001>
module attributes {stable_mosaic.version = 11 : i64} {
  func.func @_resblock_kernel(%arg0: i32, %arg1: i32, %arg2: memref<1x8x512xf32, #tpu.memory_space<vmem>>, %arg3: memref<1x3x256xf32, #tpu.memory_space<vmem>>, %arg4: memref<9x8x1xf32, #tpu.memory_space<vmem>>, %arg5: memref<8x1xf32, #tpu.memory_space<vmem>>, %arg6: memref<8x1xf32, #tpu.memory_space<vmem>>, %arg7: memref<8x8xf32, #tpu.memory_space<vmem>>, %arg8: memref<8x1xf32, #tpu.memory_space<vmem>>, %arg9: memref<8x1xf32, #tpu.memory_space<vmem>>, %arg10: memref<1x8x256xf32, #tpu.memory_space<vmem>>) attributes {dimension_semantics = [#tpu.dimension_semantics<parallel>, #tpu.dimension_semantics<parallel>], iteration_bounds = array<i64: 2, 1>, scalar_prefetch = 0 : i64, scratch_operands = 0 : i64, tpu.core_type = #tpu.core_type<tc>, window_params = [{transform_indices = @transform_0, window_bounds = array<i64: 1, 8, 512>}, {transform_indices = @transform_1, window_bounds = array<i64: 1, 3, 256>}, {pipeline_mode = #tpu.pipeline_mode<synchronous>, transform_indices = @transform_2, window_bounds = array<i64: 9, 8, 1>}, {pipeline_mode = #tpu.pipeline_mode<synchronous>, transform_indices = @transform_3, window_bounds = array<i64: 8, 1>}, {pipeline_mode = #tpu.pipeline_mode<synchronous>, transform_indices = @transform_4, window_bounds = array<i64: 8, 1>}, {pipeline_mode = #tpu.pipeline_mode<synchronous>, transform_indices = @transform_5, window_bounds = array<i64: 8, 8>}, {pipeline_mode = #tpu.pipeline_mode<synchronous>, transform_indices = @transform_6, window_bounds = array<i64: 8, 1>}, {pipeline_mode = #tpu.pipeline_mode<synchronous>, transform_indices = @transform_7, window_bounds = array<i64: 8, 1>}, {transform_indices = @transform_8, window_bounds = array<i64: 1, 8, 256>}]} {
    %c256_i32 = arith.constant 256 : i32
    %0 = arith.muli %arg1, %c256_i32 : i32
    %1 = tpu.assume_multiple %0, 256 : i32
    %c0 = arith.constant 0 : index
    %c0_0 = arith.constant 0 : index
    %2 = arith.index_cast %1 : i32 to index
    %3 = vector.load %arg2[%c0, %c0_0, %2] : memref<1x8x512xf32, #tpu.memory_space<vmem>>, vector<1x8x512xf32>
    %4 = vector.shape_cast %3 : vector<1x8x512xf32> to vector<8x512xf32>
    %c0_1 = arith.constant 0 : index
    %c0_2 = arith.constant 0 : index
    %c0_3 = arith.constant 0 : index
    %5 = vector.load %arg3[%c0_1, %c0_2, %c0_3] : memref<1x3x256xf32, #tpu.memory_space<vmem>>, vector<1x3x256xf32>
    %6 = vector.shape_cast %5 : vector<1x3x256xf32> to vector<3x256xf32>
    %cst = arith.constant 0.000000e+00 : f32
    %7 = vector.broadcast %cst : f32 to vector<8x256xf32>
    %8 = vector.extract_strided_slice %4 {offsets = [0, 111], sizes = [8, 256], strides = [1, 1]} : vector<8x512xf32> to vector<8x256xf32>
    %c0_4 = arith.constant 0 : index
    %c0_5 = arith.constant 0 : index
    %c0_6 = arith.constant 0 : index
    %9 = vector.load %arg4[%c0_4, %c0_5, %c0_6] : memref<9x8x1xf32, #tpu.memory_space<vmem>>, vector<1x8x1xf32>
    %10 = vector.shape_cast %9 : vector<1x8x1xf32> to vector<8x1xf32>
    %11 = vector.broadcast %10 : vector<8x1xf32> to vector<8x256xf32>
    %12 = arith.mulf %8, %11 : vector<8x256xf32>
    %13 = vector.extract_strided_slice %4 {offsets = [0, 127], sizes = [8, 256], strides = [1, 1]} : vector<8x512xf32> to vector<8x256xf32>
    %c3 = arith.constant 3 : index
    %c0_7 = arith.constant 0 : index
    %c0_8 = arith.constant 0 : index
    %14 = vector.load %arg4[%c3, %c0_7, %c0_8] : memref<9x8x1xf32, #tpu.memory_space<vmem>>, vector<1x8x1xf32>
    %15 = vector.shape_cast %14 : vector<1x8x1xf32> to vector<8x1xf32>
    %16 = vector.broadcast %15 : vector<8x1xf32> to vector<8x256xf32>
    %17 = arith.mulf %13, %16 : vector<8x256xf32>
    %18 = arith.addf %12, %17 : vector<8x256xf32>
    %19 = vector.extract_strided_slice %4 {offsets = [0, 143], sizes = [8, 256], strides = [1, 1]} : vector<8x512xf32> to vector<8x256xf32>
    %c6 = arith.constant 6 : index
    %c0_9 = arith.constant 0 : index
    %c0_10 = arith.constant 0 : index
    %20 = vector.load %arg4[%c6, %c0_9, %c0_10] : memref<9x8x1xf32, #tpu.memory_space<vmem>>, vector<1x8x1xf32>
    %21 = vector.shape_cast %20 : vector<1x8x1xf32> to vector<8x1xf32>
    %22 = vector.broadcast %21 : vector<8x1xf32> to vector<8x256xf32>
    %23 = arith.mulf %19, %22 : vector<8x256xf32>
    %24 = arith.addf %18, %23 : vector<8x256xf32>
    %25 = vector.extract_strided_slice %6 {offsets = [0, 0], sizes = [1, 256], strides = [1, 1]} : vector<3x256xf32> to vector<1x256xf32>
    %26 = vector.broadcast %25 : vector<1x256xf32> to vector<8x256xf32>
    %27 = arith.mulf %24, %26 : vector<8x256xf32>
    %28 = arith.addf %7, %27 : vector<8x256xf32>
    %29 = vector.extract_strided_slice %4 {offsets = [0, 112], sizes = [8, 256], strides = [1, 1]} : vector<8x512xf32> to vector<8x256xf32>
    %c1 = arith.constant 1 : index
    %c0_11 = arith.constant 0 : index
    %c0_12 = arith.constant 0 : index
    %30 = vector.load %arg4[%c1, %c0_11, %c0_12] : memref<9x8x1xf32, #tpu.memory_space<vmem>>, vector<1x8x1xf32>
    %31 = vector.shape_cast %30 : vector<1x8x1xf32> to vector<8x1xf32>
    %32 = vector.broadcast %31 : vector<8x1xf32> to vector<8x256xf32>
    %33 = arith.mulf %29, %32 : vector<8x256xf32>
    %34 = vector.extract_strided_slice %4 {offsets = [0, 128], sizes = [8, 256], strides = [1, 1]} : vector<8x512xf32> to vector<8x256xf32>
    %c4 = arith.constant 4 : index
    %c0_13 = arith.constant 0 : index
    %c0_14 = arith.constant 0 : index
    %35 = vector.load %arg4[%c4, %c0_13, %c0_14] : memref<9x8x1xf32, #tpu.memory_space<vmem>>, vector<1x8x1xf32>
    %36 = vector.shape_cast %35 : vector<1x8x1xf32> to vector<8x1xf32>
    %37 = vector.broadcast %36 : vector<8x1xf32> to vector<8x256xf32>
    %38 = arith.mulf %34, %37 : vector<8x256xf32>
    %39 = arith.addf %33, %38 : vector<8x256xf32>
    %40 = vector.extract_strided_slice %4 {offsets = [0, 144], sizes = [8, 256], strides = [1, 1]} : vector<8x512xf32> to vector<8x256xf32>
    %c7 = arith.constant 7 : index
    %c0_15 = arith.constant 0 : index
    %c0_16 = arith.constant 0 : index
    %41 = vector.load %arg4[%c7, %c0_15, %c0_16] : memref<9x8x1xf32, #tpu.memory_space<vmem>>, vector<1x8x1xf32>
    %42 = vector.shape_cast %41 : vector<1x8x1xf32> to vector<8x1xf32>
    %43 = vector.broadcast %42 : vector<8x1xf32> to vector<8x256xf32>
    %44 = arith.mulf %40, %43 : vector<8x256xf32>
    %45 = arith.addf %39, %44 : vector<8x256xf32>
    %46 = arith.addf %28, %45 : vector<8x256xf32>
    %47 = vector.extract_strided_slice %4 {offsets = [0, 113], sizes = [8, 256], strides = [1, 1]} : vector<8x512xf32> to vector<8x256xf32>
    %c2 = arith.constant 2 : index
    %c0_17 = arith.constant 0 : index
    %c0_18 = arith.constant 0 : index
    %48 = vector.load %arg4[%c2, %c0_17, %c0_18] : memref<9x8x1xf32, #tpu.memory_space<vmem>>, vector<1x8x1xf32>
    %49 = vector.shape_cast %48 : vector<1x8x1xf32> to vector<8x1xf32>
    %50 = vector.broadcast %49 : vector<8x1xf32> to vector<8x256xf32>
    %51 = arith.mulf %47, %50 : vector<8x256xf32>
    %52 = vector.extract_strided_slice %4 {offsets = [0, 129], sizes = [8, 256], strides = [1, 1]} : vector<8x512xf32> to vector<8x256xf32>
    %c5 = arith.constant 5 : index
    %c0_19 = arith.constant 0 : index
    %c0_20 = arith.constant 0 : index
    %53 = vector.load %arg4[%c5, %c0_19, %c0_20] : memref<9x8x1xf32, #tpu.memory_space<vmem>>, vector<1x8x1xf32>
    %54 = vector.shape_cast %53 : vector<1x8x1xf32> to vector<8x1xf32>
    %55 = vector.broadcast %54 : vector<8x1xf32> to vector<8x256xf32>
    %56 = arith.mulf %52, %55 : vector<8x256xf32>
    %57 = arith.addf %51, %56 : vector<8x256xf32>
    %58 = vector.extract_strided_slice %4 {offsets = [0, 145], sizes = [8, 256], strides = [1, 1]} : vector<8x512xf32> to vector<8x256xf32>
    %c8 = arith.constant 8 : index
    %c0_21 = arith.constant 0 : index
    %c0_22 = arith.constant 0 : index
    %59 = vector.load %arg4[%c8, %c0_21, %c0_22] : memref<9x8x1xf32, #tpu.memory_space<vmem>>, vector<1x8x1xf32>
    %60 = vector.shape_cast %59 : vector<1x8x1xf32> to vector<8x1xf32>
    %61 = vector.broadcast %60 : vector<8x1xf32> to vector<8x256xf32>
    %62 = arith.mulf %58, %61 : vector<8x256xf32>
    %63 = arith.addf %57, %62 : vector<8x256xf32>
    %64 = vector.extract_strided_slice %6 {offsets = [2, 0], sizes = [1, 256], strides = [1, 1]} : vector<3x256xf32> to vector<1x256xf32>
    %65 = vector.broadcast %64 : vector<1x256xf32> to vector<8x256xf32>
    %66 = arith.mulf %63, %65 : vector<8x256xf32>
    %67 = arith.addf %46, %66 : vector<8x256xf32>
    %c0_23 = arith.constant 0 : index
    %c0_24 = arith.constant 0 : index
    %68 = vector.load %arg5[%c0_23, %c0_24] : memref<8x1xf32, #tpu.memory_space<vmem>>, vector<8x1xf32>
    %69 = vector.broadcast %68 : vector<8x1xf32> to vector<8x256xf32>
    %70 = arith.mulf %67, %69 : vector<8x256xf32>
    %c0_25 = arith.constant 0 : index
    %c0_26 = arith.constant 0 : index
    %71 = vector.load %arg6[%c0_25, %c0_26] : memref<8x1xf32, #tpu.memory_space<vmem>>, vector<8x1xf32>
    %72 = vector.broadcast %71 : vector<8x1xf32> to vector<8x256xf32>
    %73 = arith.addf %70, %72 : vector<8x256xf32>
    %cst_27 = arith.constant 0.000000e+00 : f32
    %74 = vector.broadcast %cst_27 : f32 to vector<8x256xf32>
    %75 = arith.maximumf %73, %74 : vector<8x256xf32>
    %c0_28 = arith.constant 0 : index
    %c0_29 = arith.constant 0 : index
    %76 = vector.load %arg7[%c0_28, %c0_29] : memref<8x8xf32, #tpu.memory_space<vmem>>, vector<8x8xf32>
    %cst_30 = arith.constant dense<0.000000e+00> : vector<8x256xf32>
    %77 = tpu.matmul %76, %75, %cst_30 {dimension_numbers = #tpu.dot_dimension_numbers<[1], [0], [0], [1], [0, 0, 1, 1], [], []>} : vector<8x8xf32>, vector<8x256xf32>, vector<8x256xf32> -> vector<8x256xf32>
    %c0_31 = arith.constant 0 : index
    %c0_32 = arith.constant 0 : index
    %78 = vector.load %arg8[%c0_31, %c0_32] : memref<8x1xf32, #tpu.memory_space<vmem>>, vector<8x1xf32>
    %79 = vector.broadcast %78 : vector<8x1xf32> to vector<8x256xf32>
    %80 = arith.mulf %77, %79 : vector<8x256xf32>
    %c0_33 = arith.constant 0 : index
    %c0_34 = arith.constant 0 : index
    %81 = vector.load %arg9[%c0_33, %c0_34] : memref<8x1xf32, #tpu.memory_space<vmem>>, vector<8x1xf32>
    %82 = vector.broadcast %81 : vector<8x1xf32> to vector<8x256xf32>
    %83 = arith.addf %80, %82 : vector<8x256xf32>
    %cst_35 = arith.constant 0.000000e+00 : f32
    %84 = vector.broadcast %cst_35 : f32 to vector<8x256xf32>
    %85 = arith.maximumf %83, %84 : vector<8x256xf32>
    %86 = vector.extract_strided_slice %4 {offsets = [0, 128], sizes = [8, 256], strides = [1, 1]} : vector<8x512xf32> to vector<8x256xf32>
    %87 = arith.addf %86, %85 : vector<8x256xf32>
    %c0_36 = arith.constant 0 : index
    %c0_37 = arith.constant 0 : index
    %c0_38 = arith.constant 0 : index
    %88 = vector.load %arg10[%c0_36, %c0_37, %c0_38] : memref<1x8x256xf32, #tpu.memory_space<vmem>>, vector<1x8x256xf32>
    %89 = vector.shape_cast %88 : vector<1x8x256xf32> to vector<8x256xf32>
    %90 = vector.shape_cast %87 : vector<8x256xf32> to vector<1x8x256xf32>
    tpu.vector_store %arg10[%c0_36, %c0_37, %c0_38], %90 {strides = array<i32>} : memref<1x8x256xf32, #tpu.memory_space<vmem>>, vector<1x8x256xf32>,
    return
  }
  func.func @transform_0(%arg0: i32, %arg1: i32) -> (i32, i32, i32) {
    %c0_i32 = arith.constant 0 : i32
    %c0_i32_0 = arith.constant 0 : i32
    %c0_i32_1 = arith.constant 0 : i32
    return %arg0, %c0_i32, %c0_i32_0 : i32, i32, i32
  }
  func.func @transform_1(%arg0: i32, %arg1: i32) -> (i32, i32, i32) {
    %c0_i32 = arith.constant 0 : i32
    %c0_i32_0 = arith.constant 0 : i32
    %c0_i32_1 = arith.constant 0 : i32
    return %arg1, %c0_i32, %c0_i32_0 : i32, i32, i32
  }
  func.func @transform_2(%arg0: i32, %arg1: i32) -> (i32, i32, i32) {
    %c0_i32 = arith.constant 0 : i32
    %c0_i32_0 = arith.constant 0 : i32
    %c0_i32_1 = arith.constant 0 : i32
    %c0_i32_2 = arith.constant 0 : i32
    return %c0_i32, %c0_i32_0, %c0_i32_1 : i32, i32, i32
  }
  func.func @transform_3(%arg0: i32, %arg1: i32) -> (i32, i32) {
    %c0_i32 = arith.constant 0 : i32
    %c0_i32_0 = arith.constant 0 : i32
    %c0_i32_1 = arith.constant 0 : i32
    return %c0_i32, %c0_i32_0 : i32, i32
  }
  func.func @transform_4(%arg0: i32, %arg1: i32) -> (i32, i32) {
    %c0_i32 = arith.constant 0 : i32
    %c0_i32_0 = arith.constant 0 : i32
    %c0_i32_1 = arith.constant 0 : i32
    return %c0_i32, %c0_i32_0 : i32, i32
  }
  func.func @transform_5(%arg0: i32, %arg1: i32) -> (i32, i32) {
    %c0_i32 = arith.constant 0 : i32
    %c0_i32_0 = arith.constant 0 : i32
    %c0_i32_1 = arith.constant 0 : i32
    return %c0_i32, %c0_i32_0 : i32, i32
  }
  func.func @transform_6(%arg0: i32, %arg1: i32) -> (i32, i32) {
    %c0_i32 = arith.constant 0 : i32
    %c0_i32_0 = arith.constant 0 : i32
    %c0_i32_1 = arith.constant 0 : i32
    return %c0_i32, %c0_i32_0 : i32, i32
  }
  func.func @transform_7(%arg0: i32, %arg1: i32) -> (i32, i32) {
    %c0_i32 = arith.constant 0 : i32
    %c0_i32_0 = arith.constant 0 : i32
    %c0_i32_1 = arith.constant 0 : i32
    return %c0_i32, %c0_i32_0 : i32, i32
  }
  func.func @transform_8(%arg0: i32, %arg1: i32) -> (i32, i32, i32) {
    %c0_i32 = arith.constant 0 : i32
    %c0_i32_0 = arith.constant 0 : i32
    return %arg0, %c0_i32, %arg1 : i32, i32, i32
  }
}

</mosaic_0001>

<bundles_post_ra>
// kernel: tpu_custom_call.1
= control target key start
LH: loop header
LB: loop body
LE: loop exit
PB: predicated region body
PF: predicated region fallthrough
CT: control target
= control target key end

     0   :  { %13 = vsyncpa [#allocation3], 0  ;;  %s1310_s0 = inlined_call_operand.vmem [shape: f32[2,8,512], index: 0, kind: input, shape index: {}]   ;;  %s1311_s1 = inlined_call_operand.vmem [shape: f32[1,3,256], index: 1, kind: input, shape index: {}]   ;;  %s1312_s2 = inlined_call_operand.vmem [shape: f32[9,8,1], index: 2, kind: input, shape index: {}]   ;;  %s1313_s3 = inlined_call_operand.vmem [shape: f32[8,1], index: 3, kind: input, shape index: {}]   ;;  %s1314_s4 = inlined_call_operand.vmem [shape: f32[8,1], index: 4, kind: input, shape index: {}]   ;;  %s1315_s5 = inlined_call_operand.vmem [shape: f32[8,8], index: 5, kind: input, shape index: {}]   ;;  %s1316_s6 = inlined_call_operand.vmem [shape: f32[8,1], index: 6, kind: input, shape index: {}]   ;;  %s1317_s7 = inlined_call_operand.vmem [shape: f32[8,1], index: 7, kind: input, shape index: {}]   ;;  %s1318_s8 = inlined_call_operand.hbm [shape: f32[2,8,256], index: 8, kind: output, shape index: {}]  }
   0x1   :  { %15 = vsyncpa [#allocation3 + $0x1], 0  ;;  %s1102_s27 = smov 0   ;;  %s1104_s28 = smov 0  }
   0x2   :  { %s1106_s29 = smov 0   ;;  %s1108_s30 = smov 0  }
   0x3   :  { %s1110_s9 = smov 0   ;;  %s1112_s10 = smov 0  }
   0x4 LB: > { %s878_s11 = sadd.s32 4294967295, %s1045_s10   ;;  %s879_s12 = sadd.s32 4294967294, %s1045_s10   ;;  %s1045_s10 = sphi %s1112_s10, %s21_s10   ;;  %s1041_s9 = sphi %s1110_s9, %s1325_s9   ;;  %s1037_s30 = sphi %s1108_s30, %s1324_s30   ;;  %s1033_s29 = sphi %s1106_s29, %s1323_s29   ;;  %s1029_s28 = sphi %s1104_s28, %s1322_s28   ;;  %s1025_s27 = sphi %s1102_s27, %s1321_s27  }
   0x5   : > { %s33_s13 = sadd.s32 1, %s1041_s9  ;;  %s220_s14 = sadd.s32 1, %s1033_s29 }
   0x6   : > { %p35_p0 = scmp.ge.s32.totalorder %s33_s13, 2  ;;  %p230_p1 = scmp.ne.s32.totalorder %s1033_s29, %s1029_s28 }
   0x7   : > { %p231_p2 = scmp.eq.s32.totalorder %s878_s11, 1  ;;  %p236_p3 = scmp.ne.s32.totalorder %s1029_s28, %s1025_s27 }
   0x8   : > { %s1327_s13 = smov (%p35_p0, %s33_s13), 0  ;;  %p237_p5 = scmp.eq.s32.totalorder %s879_s12, 1 }
   0x9   : > { %p1142_p4 = por %p231_p2, %p230_p1  ;;  %s215_s16 = ssub.s32 %s1041_s9, %s1327_s13 }
   0xa   : > { %p883_p6 = scmp.ge.s32.totalorder %s1045_s10, 1  ;;  %p218_p7 = scmp.eq.s32.totalorder %s215_s16, 0 }
   0xb   : > { %p1149_p8 = por %p237_p5, %p236_p3  ;;  %p289_p9 = scmp.lt.s32.totalorder %s1045_s10, 3 }
   0xc   : > { %s1155_s18 = scalar_select %p218_p7, %s1033_s29, %s220_s14  }
   0xd   : > { %p290_p10 = pnand %p883_p6, %p289_p9 }
   0xe   : > { %p328_p11 = scmp.lt.s32.totalorder (!%p290_p10), %s1037_s30, 1  ;;  %s1048_s12 = smov (!%p290_p10), 112  }
   0xf   : > { %293 = sbr.rel (%p290_p10) target bundleno = 759 (0x2f7), region = 52  ;;  %s1049_s14 = smov (!%p290_p10), 96  }
  0x10   : > { %s1050_s20 = smov (!%p290_p10), 113   ;;  %s1052_s26 = smov (!%p290_p10), 127  }
  0x11   : > { %s1055_s16 = smov (!%p290_p10), 17   ;;  %s325_s25 = sand.u32 (!%p290_p10), 1, %s1029_s28  }
  0x12   : > { %s775_s21 = scalar_lea.sflag (!%p290_p10), [#allocation3], %s325_s25 }
  0x14   : > { %v891_v0 = vld [vmem:[%s1312_s2 + $0x38] sm:$0xff]  ;;  %v890_v1 = vld [vmem:[%s1312_s2 + $0x20] sm:$0xff]  ;;  %v1047_v2 = vmov 0   ;;  %v893_v4 = vld [vmem:[%s1312_s2 + $0x28] sm:$0xff]  ;;  %s329_s23 = scalar_select %p328_p11, %s1037_s30, 1  ;;  %v415_v15 = vlaneseq  ;;  %vm377_vm0 = vcmask 916480  }
  0x15   : > { %968 = vset.pattern.permute.xlu1 %v1047_v2  ;;  %967 = vset.pattern.permute.xlu0 %v1047_v2  ;;  %v894_v3 = vld [vmem:[%s1312_s2 + $0x40] sm:$0xff]  ;;  %v888_v5 = vld [vmem:[%s1312_s2 + $0x30] sm:$0xff]  ;;  %v887_v6 = vld [vmem:[%s1312_s2 + $0x18] sm:$0xff]  ;;  %vm405_vm1 = vcmask 785408   ;;  %vm615_vm2 = vcmask 924672   ;;  %vm439_vm3 = vcmask 908288  }
  0x16   : > { %486 = vperm.xlu1 %968, %v891_v0   ;;  %464 = vperm.xlu0 %967, %v890_v1   ;;  %v892_v7 = vld [vmem:[%s1312_s2 + $0x10] sm:$0xff]  ;;  %v889_v8 = vld [vmem:[%s1312_s2 + $0x8] sm:$0xff]  ;;  %s901_s24 = sshll.u32 %s329_s23, 5  ;;  %v416_v21 = vshrl.u32 %v415_v15, 7  ;;  %v348_v26 = vld [vmem:[%s1311_s1] sm:$0x77] }
  0x17   : > { %s1186_s11 = scalar_lea.vmem %s1310_s0, %s901_s24  ;;  %v349_v40 = vld [vmem:[%s1312_s2] sm:$0xff]  ;;  %s1051_s23 = smov 111   ;;  %vm518_vm4 = vcmask 1039360   ;;  %vm632_vm5 = vcmask 1031168   ;;  %vm672_vm6 = vcmask 138240   ;;  %vm677_vm7 = vcmask 64512  }
  0x18   : > { %v1189_v9 = vld [vmem:[%s1186_s11 + $0x8] sm:$0xff]  ;;  %v1192_v10 = vld [vmem:[%s1186_s11 + $0x10] sm:$0xff]  ;;  %v347_v17 = vld [vmem:[%s1186_s11 + $0x18] sm:$0xff]  ;;  %v593_v25 = vsub.s32 2, %v416_v21  ;;  %v597_v27 = vsub.s32 6, %v416_v21  ;;  %v417_v33 = vsub.s32 0, %v416_v21 }
  0x19   : > { %v421_v35 = vsub.s32 4, %v416_v21  ;;  %v641_v44 = vld [vmem:[%s1313_s3] sm:$0xff] }
  0x1a   : > { %568 = vperm.xlu1 %968, %v894_v3   ;;  %541 = vperm.xlu0 %967, %v893_v4   ;;  %v594_v29 = vrot.slane %v348_v26, %v593_v25  ;;  %v598_v32 = vrot.slane %v348_v26, %v597_v27  ;;  %v418_v38 = vrot.slane %v348_v26, %v417_v33  ;;  %v1228_v49 = vld [vmem:[%s1186_s11] sm:$0xff]  ;;  %s1053_s11 = smov 126  }
  0x1b   : > { %v422_v39 = vrot.slane %v348_v26, %v421_v35  ;;  %v650_v35 = vld [vmem:[%s1314_s4] sm:$0xff] }
  0x1c   : > { %v604_v34 = vrot.slane %v594_v29, %v593_v25  ;;  %v608_v37 = vrot.slane %v598_v32, %v593_v25  ;;  %v428_v41 = vrot.slane %v418_v38, %v417_v33 }
  0x1d   : > { %v432_v42 = vrot.slane %v422_v39, %v417_v33 }
  0x1e   : > { %390 = vperm.xlu1 %968, %v888_v5   ;;  %362 = vperm.xlu0 %967, %v887_v6  }
  0x22   : > { %531 = vperm.xlu1 %968, %v892_v7   ;;  %454 = vperm.xlu0 %967, %v889_v8  }
  0x91   : > { %v465_v11 = vpop.permute.xlu0 %464  ;;  %v487_v19 = vpop.permute.xlu1 %486 }
  0x92   : > { %v467_v12 = vmul.f32 %v465_v11, %v1189_v9  ;;  %v468_v13 = vmul.f32 %v465_v11, %v1192_v10  ;;  %v489_v20 = vmul.f32 %v487_v19, %v1189_v9  ;;  %v490_v23 = vmul.f32 %v487_v19, %v1192_v10 }
  0x93   : > { %v491_v24 = vmul.f32 %v487_v19, %v347_v17 }
  0x94   : > { %471 = vrot.lane.b32.xlu0 %v467_v12, %s1048_s12  ;;  %473 = vrot.lane.b32.xlu1 %v468_v13, %s1048_s12 }
  0x95   : > { %v542_v14 = vpop.permute.xlu0 %541  ;;  %v569_v28 = vpop.permute.xlu1 %568 }
  0x96   : > { %v544_v16 = vmul.f32 %v542_v14, %v1189_v9  ;;  %v545_v18 = vmul.f32 %v542_v14, %v1192_v10  ;;  %v546_v22 = vmul.f32 %v542_v14, %v347_v17  ;;  %v571_v30 = vmul.f32 %v569_v28, %v1189_v9 }
  0x97   : > { %v572_v31 = vmul.f32 %v569_v28, %v1192_v10  ;;  %v573_v36 = vmul.f32 %v569_v28, %v347_v17 }
  0x98   : > { %550 = vrot.lane.b32.xlu0 %v544_v16, %s1048_s12  ;;  %552 = vrot.lane.b32.xlu1 %v545_v18, %s1048_s12 }
  0x99   : > { %v363_v43 = vpop.permute.xlu0 %362  ;;  %v391_v46 = vpop.permute.xlu1 %390 }
  0x9a   : > { %v367_v45 = vmul.f32 %v363_v43, %v1192_v10  ;;  %v366_v47 = vmul.f32 %v363_v43, %v1189_v9  ;;  %v393_v48 = vmul.f32 %v391_v46, %v1189_v9  ;;  %v365_v50 = vmul.f32 %v363_v43, %v1228_v49 }
  0x9b   : > { %v395_v51 = vmul.f32 %v391_v46, %v347_v17  ;;  %v394_v52 = vmul.f32 %v391_v46, %v1192_v10 }
  0x9c   : > { %554 = vrot.lane.b32.xlu0 %v546_v22, %s1048_s12  ;;  %495 = vrot.lane.b32.xlu1 %v489_v20, %s1049_s14 }
  0x9d   : > { %v455_v53 = vpop.permute.xlu0 %454  ;;  %v532_v54 = vpop.permute.xlu1 %531 }
  0x9e   : > { %v458_v62 = vmul.f32 %v455_v53, %v1189_v9  ;;  %v459_v63 = vmul.f32 %v455_v53, %v1192_v10  ;;  %v457_v7 = vmul.f32 %v455_v53, %v1228_v49  ;;  %v536_v14 = vmul.f32 %v532_v54, %v1192_v10 }
  0x9f   : > { %v535_v18 = vmul.f32 %v532_v54, %v1189_v9  ;;  %v534_v25 = vmul.f32 %v532_v54, %v1228_v49 }
  0xa0   : > { %497 = vrot.lane.b32.xlu0 %v490_v23, %s1049_s14  ;;  %499 = vrot.lane.b32.xlu1 %v491_v24, %s1049_s14 }
  0xa4   : > { %577 = vrot.lane.b32.xlu0 %v571_v30, %s1049_s14  ;;  %579 = vrot.lane.b32.xlu1 %v572_v31, %s1049_s14 }
  0xa8   : > { %581 = vrot.lane.b32.xlu0 %v573_v36, %s1049_s14  ;;  %611 = vrot.lane.b32.xlu1 %v604_v34, %s1050_s20 }
  0xac   : > { %613 = vrot.lane.b32.xlu0 %v608_v37, %s1050_s20  ;;  %352 = vperm.xlu1 %968, %v349_v40  }
  0xb0   : > { %435 = vrot.lane.b32.xlu0 %v428_v41, %s1051_s23  ;;  %437 = vrot.lane.b32.xlu1 %v432_v42, %s1051_s23 }
  0xb4   : > { %644 = vperm.xlu0 %967, %v641_v44   ;;  %375 = vrot.lane.b32.xlu1 %v367_v45, %s1048_s12 }
  0xb8   : > { %373 = vrot.lane.b32.xlu0 %v366_v47, %s1048_s12  ;;  %399 = vrot.lane.b32.xlu1 %v393_v48, %s1049_s14 }
  0xbc   : > { %371 = vrot.lane.b32.xlu0 %v365_v50, %s1048_s12  ;;  %403 = vrot.lane.b32.xlu1 %v395_v51, %s1049_s14 }
  0xc0   : > { %401 = vrot.lane.b32.xlu0 %v394_v52, %s1049_s14 }
 0x106   : > { %v472_v55 = vpop.permute.xlu0 %471  ;;  %v474_v56 = vpop.permute.xlu1 %473 }
 0x107   : > { %v475_v60 = vsel %vm377_vm0, %v472_v55, %v474_v56  ;;  %v481_v2 = vadd.f32 %v474_v56, %v459_v63  ;;  %v479_v12 = vadd.f32 %v472_v55, %v457_v7 }
 0x108   : > { %v480_v0 = vadd.f32 %v475_v60, %v458_v62 }
 0x10a   : > { %v551_v57 = vpop.permute.xlu0 %550  ;;  %v553_v58 = vpop.permute.xlu1 %552 }
 0x10b   : > { %v556_v16 = vsel %vm377_vm0, %v551_v57, %v553_v58  ;;  %v561_v29 = vadd.f32 %v551_v57, %v534_v25 }
 0x10c   : > { %v562_v23 = vadd.f32 %v556_v16, %v535_v18 }
 0x10e   : > { %v555_v59 = vpop.permute.xlu0 %554  ;;  %v496_v61 = vpop.permute.xlu1 %495 }
 0x10f   : > { %v557_v13 = vsel %vm377_vm0, %v553_v58, %v555_v59  ;;  %v506_v17 = vadd.f32 %v496_v61, %v479_v12 }
 0x110   : > { %v563_v19 = vadd.f32 %v557_v13, %v536_v14 }
 0x112   : > { %v498_v1 = vpop.permute.xlu0 %497  ;;  %v500_v3 = vpop.permute.xlu1 %499 }
 0x113   : > { %v501_v4 = vsel %vm405_vm1, %v496_v61, %v498_v1  ;;  %v502_v5 = vsel %vm405_vm1, %v498_v1, %v500_v3 }
 0x114   : > { %v507_v6 = vadd.f32 %v501_v4, %v480_v0  ;;  %v508_v8 = vadd.f32 %v502_v5, %v481_v2 }
 0x116   : > { %v578_v11 = vpop.permute.xlu0 %577  ;;  %514 = vrot.lane.b32.xlu0 %v507_v6, %s1052_s26  ;;  %516 = vrot.lane.b32.xlu1 %v508_v8, %s1052_s26  ;;  %v580_v15 = vpop.permute.xlu1 %579 }
 0x117   : > { %v583_v21 = vsel %vm405_vm1, %v578_v11, %v580_v15  ;;  %v588_v33 = vadd.f32 %v578_v11, %v561_v29  ;;  %v760_v29 = vld [vmem:[%s1317_s7] sm:$0xff] }
 0x118   : > { %v589_v26 = vadd.f32 %v583_v21, %v562_v23 }
 0x11a   : > { %v582_v20 = vpop.permute.xlu0 %581  ;;  %512 = vrot.lane.b32.xlu1 %v506_v17, %s1052_s26  ;;  %v612_v27 = vpop.permute.xlu1 %611  ;;  %v1054_v17 = vmov 0.0   ;;  %s884_s26 = sshll.u32 %s325_s25, 4 }
 0x11b   : > { %v584_v22 = vsel %vm405_vm1, %v580_v15, %v582_v20  ;;  %v620_v34 = vmul.f32 %v612_v27, %v588_v33  ;;  %745 = vmatprep.mubr.f32.mxu0 %v1054_v17  ;;  %s327_s12 = scalar_lea.vmem [#allocation2], %s884_s26 }
 0x11c   : > { %v590_v24 = vadd.f32 %v584_v22, %v563_v19  ;;  %s791_s14 = sshll.u32 %s327_s12, 4  ;;  %s792_s14 = int_to_ptr.vmem [resolvable:$true] %s791_s14 }
 0x11d   : > { %s969_s22 = scalar_lea.vmem %s792_s14, 256 }
 0x11e   : > { %v614_v28 = vpop.permute.xlu0 %613  ;;  %p970_p12 = scmp.ne.s32.totalorder %s792_s14, %s969_s22 }
 0x11f   : > { %v616_v30 = vsel %vm615_vm2, %v612_v27, %v614_v28  ;;  %v622_v31 = vmul.f32 %v614_v28, %v590_v24  ;;  %v752_v27 = vld [vmem:[%s1316_s6] sm:$0xff] }
 0x120   : > { %v621_v32 = vmul.f32 %v616_v30, %v589_v26  ;;  %p971_p13 = pnand %p970_p12, %p1142_p4 }
 0x121   : > { %630 = vrot.lane.b32.xlu1 %v622_v31, %s1053_s11 }
 0x122   : > { %628 = vrot.lane.b32.xlu0 %v621_v32, %s1053_s11  ;;  %v436_v37 = vpop.permute.xlu0 %435  ;;  %p972_p0 = pneg %p971_p13 }
 0x125   : > { %626 = vrot.lane.b32.xlu1 %v620_v34, %s1053_s11  ;;  %v662_v34 = vld [vmem:[%s1315_s5] sm:$0xff]  ;;  %s902_s11 = sshll.u32 %s1037_s30, 8  ;;  %s1056_s30 = smov [#allocation2]  }
 0x126   : > { %653 = vperm.xlu0 %967, %v650_v35   ;;  %s789_s20 = scalar_lea.hbm %s1318_s8, %s902_s11  ;;  %s973_s23 = sshll.u32 %s1056_s30, 4  ;;  %s974_s23 = int_to_ptr.vmem [resolvable:$false] %s973_s23 }
 0x127   : > { %v353_v36 = vpop.permute.xlu1 %352  ;;  %s975_s24 = scalar_lea.vmem %s974_s23, 512  ;;  %p976_p1 = scmp.lt.s32.totalorder %s792_s14, %s974_s23 }
 0x128   : > { %v356_v44 = vmul.f32 %v353_v36, %v1189_v9  ;;  %v355_v55 = vmul.f32 %v353_v36, %v1228_v49  ;;  %v357_v56 = vmul.f32 %v353_v36, %v1192_v10  ;;  %p977_p2 = scmp.lt.s32.totalorder %s975_s24, %s969_s22 }
 0x12a   : > { %p978_p3 = por %p977_p2, %p976_p1 }
 0x12b   : > { %v438_v38 = vpop.permute.xlu1 %437 }
 0x12c   : > { %v440_v63 = vsel %vm439_vm3, %v436_v37, %v438_v38  ;;  %p979_p5 = pnand %p978_p3, %p972_p0 }
 0x12f   : > { %v645_v39 = vpop.permute.xlu0 %644  ;;  %v376_v41 = vpop.permute.xlu1 %375 }
 0x130   : > { %v385_v58 = vadd.f32 %v376_v41, %v357_v56 }
 0x133   : > { %v374_v40 = vpop.permute.xlu0 %373  ;;  %v400_v45 = vpop.permute.xlu1 %399 }
 0x134   : > { %v379_v43 = vsel %vm377_vm0, %v374_v40, %v376_v41 }
 0x135   : > { %v384_v46 = vadd.f32 %v379_v43, %v356_v44 }
 0x137   : > { %v372_v42 = vpop.permute.xlu0 %371  ;;  %v404_v51 = vpop.permute.xlu1 %403 }
 0x138   : > { %v378_v53 = vsel %vm377_vm0, %v372_v42, %v374_v40 }
 0x139   : > { %v383_v59 = vadd.f32 %v378_v53, %v355_v55 }
 0x13b   : > { %v402_v47 = vpop.permute.xlu0 %401  ;;  %v411_v0 = vadd.f32 %v400_v45, %v383_v59 }
 0x13c   : > { %v406_v48 = vsel %vm405_vm1, %v400_v45, %v402_v47  ;;  %v407_v57 = vsel %vm405_vm1, %v402_v47, %v404_v51 }
 0x13d   : > { %v412_v50 = vadd.f32 %v406_v48, %v384_v46  ;;  %v413_v62 = vadd.f32 %v407_v57, %v385_v58  ;;  %v444_v11 = vmul.f32 %v436_v37, %v411_v0 }
 0x13f   : > { %v446_v3 = vmul.f32 %v438_v38, %v413_v62  ;;  %v445_v4 = vmul.f32 %v440_v63, %v412_v50 }
 0x188   : > { %v517_v52 = vpop.permute.xlu1 %516  ;;  %v515_v60 = vpop.permute.xlu0 %514 }
 0x189   : > { %v520_v2 = vsel %vm518_vm4, %v515_v60, %v517_v52  ;;  %v526_v7 = vadd.f32 %v517_v52, %v446_v3 }
 0x18a   : > { %v525_v8 = vadd.f32 %v520_v2, %v445_v4 }
 0x18c   : > { %v513_v54 = vpop.permute.xlu1 %512 }
 0x18d   : > { %v519_v49 = vsel %vm518_vm4, %v513_v54, %v515_v60 }
 0x18e   : > { %v524_v13 = vadd.f32 %v519_v49, %v444_v11 }
 0x193   : > { %v631_v61 = vpop.permute.xlu1 %630 }
 0x194   : > { %v629_v1 = vpop.permute.xlu0 %628  ;;  %v640_v14 = vadd.f32 %v631_v61, %v526_v7 }
 0x195   : > { %v634_v6 = vsel %vm632_vm5, %v629_v1, %v631_v61 }
 0x196   : > { %v639_v15 = vadd.f32 %v634_v6, %v525_v8  ;;  %v649_v18 = vmul.f32 %v645_v39, %v640_v14 }
 0x197   : > { %v627_v5 = vpop.permute.xlu1 %626 }
 0x198   : > { %v633_v12 = vsel %vm632_vm5, %v627_v5, %v629_v1  ;;  %v648_v19 = vmul.f32 %v645_v39, %v639_v15 }
 0x199   : > { %v638_v16 = vadd.f32 %v633_v12, %v524_v13 }
 0x19b   : > { %v647_v21 = vmul.f32 %v645_v39, %v638_v16 }
 0x1a1   : > { %v654_v20 = vpop.permute.xlu0 %653 }
 0x1a2   : > { %v657_v22 = vadd.f32 %v654_v20, %v648_v19  ;;  %v658_v23 = vadd.f32 %v654_v20, %v649_v18  ;;  %v656_v24 = vadd.f32 %v654_v20, %v647_v21 }
 0x1a4   : > { %v661_v25 = vmax.f32 %v658_v23, 0.0  ;;  %v660_v26 = vmax.f32 %v657_v22, 0.0  ;;  %v659_v28 = vmax.f32 %v656_v24, 0.0 }
 0x1a6   : > { %670 = vrot.lane.b32.xlu1 %v661_v25, %s1055_s16  ;;  %668 = vrot.lane.b32.xlu0 %v660_v26, %s1055_s16 }
 0x1aa   : > { %755 = vperm.xlu1 %968, %v752_v27   ;;  %666 = vrot.lane.b32.xlu0 %v659_v28, %s1055_s16 }
 0x1ae   : > { %763 = vperm.xlu0 %967, %v760_v29  }
 0x218   : > { %v671_v30 = vpop.permute.xlu1 %670  ;;  %v669_v31 = vpop.permute.xlu0 %668 }
 0x219   : > { %v674_v32 = vsel %vm672_vm6, %v669_v31, %v671_v30 }
 0x21a   : > { %711 = vmatprep.subr.mxu0 %v674_v32 }
 0x21c   : > { %v667_v33 = vpop.permute.xlu0 %666 }
 0x21d   : > { %v673_v35 = vsel %vm672_vm6, %v667_v33, %v669_v31 }
 0x21e   : > { %712 = vmatpush1.msra.mxu0 %v673_v35 }
 0x21f   : > { %895 = vmatmul.mubr.msk.f32.vlgmr.msra.gmra.mxu0 %vm677_vm7, %v662_v34 }
 0x225   : > { %v756_v36 = vpop.permute.xlu1 %755 }
 0x229   : > { %v764_v39 = vpop.permute.xlu0 %763 }
 0x2df   : > { %v747_v37 = vpop.f32.mrf.mxu0 }
 0x2e0   : > { %v758_v38 = vmul.f32 %v756_v36, %v747_v37 }
 0x2e1   : > { %v749_v40 = vpop.f32.mrf.mxu0 }
 0x2e2   : > { %v766_v41 = vadd.f32 %v764_v39, %v758_v38  ;;  %v759_v42 = vmul.f32 %v756_v36, %v749_v40 }
 0x2e4   : > { %v768_v43 = vmax.f32 %v766_v41, 0.0  ;;  %v767_v44 = vadd.f32 %v764_v39, %v759_v42 }
 0x2e6   : > { %v770_v45 = vadd.f32 %v768_v43, %v1189_v9  ;;  %v769_v46 = vmax.f32 %v767_v44, 0.0 }
 0x2e8   : > { %v771_v47 = vadd.f32 %v769_v46, %v1192_v10  ;;  %772 = vst [vmem:[%s327_s12] sm:$0xff] %v770_v45 }
 0x2ea   : > { %773 = vst [vmem:[%s327_s12 + $0x8] sm:$0xff] %v771_v47 }
 0x2eb   : > { %982 = shalt.err (!%p979_p5)
}
 0x2ec   : > { %s983_s26 = scalar_lea.hbm %s789_s20, 256  ;;  %s987_s12 = scalar_lea.hbm %s1318_s8, 512 }
 0x2ed   : > { %p984_p6 = scmp.ne.s32.totalorder %s789_s20, %s983_s26  ;;  %p988_p10 = scmp.lt.s32.totalorder %s789_s20, %s1318_s8 }
 0x2ee   : > { %p989_p11 = scmp.lt.s32.totalorder %s987_s12, %s983_s26 }
 0x2ef   : > { %p985_p7 = pnand %p984_p6, %p1142_p4 }
 0x2f0   : > { %p990_p12 = por %p989_p11, %p988_p10 }
 0x2f1   : > { %p986_p9 = pneg %p985_p7 }
 0x2f3   : > { %p991_p13 = pnand %p990_p12, %p986_p9 }
 0x2f5   : > { %994 = shalt.err (!%p991_p13)
}
 0x2f6   : > { %903 = dma.vmem_to_hbm [thread:$0]  (%p1142_p4), %s792_s14, 256, %s789_s20, %s775_s21  }
 0x2f7 PF: > { %p909_p0 = scmp.ge.s32.totalorder %s1045_s10, 2  ;;  %s803_s22 = sand.u32 1, %s1025_s27  }
 0x2f8   : > { %s804_s30 = scalar_lea.sflag [#allocation3], %s803_s22 }
 0x2f9   : > { %p906_p1 = pnand %p909_p0, %p1149_p8 }
 0x2fb   : > { %p907_p2 = pneg %p906_p1 }
 0x2fd   : > { %1020 = dma.done.wait (%p907_p2), %s804_s30, 256  }
 0x2fe   : > { %1022 = vsyncadd (%p907_p2), %s804_s30, 4294967040  ;;  %s21_s10 = sadd.s32 1, %s1045_s10   ;;  %s1321_s27 = smov %s1029_s28 }
 0x2ff   : > { %p18_p3 = scmp.ge.s32.totalorder %s21_s10, 4   ;;  %s1322_s28 = smov %s1033_s29 }
 0x300   : > { %s1323_s29 = smov %s1155_s18  ;;  %s1324_s30 = smov %s1041_s9 }
 0x301   : > { %s1325_s9 = smov %s1327_s13  ;;  %20 = sbr.rel (!%p18_p3) target bundleno = 4 (0x4), region = 99 }
 0x306   :  { %809 = vsyncpa [#allocation3], 1 }
 0x307   :  { %811 = vsyncpa [#allocation3 + $0x1], 1 }

</bundles_post_ra>
